<compile_context>
chip_gen: v6e
topology: v6e:2x2x1
jax: 0.10.0
libtpu: 0.0.40
codegen_flags: <defaults>
</compile_context>

<pallas_src>
import math
import numpy as np
import jax
import jax.numpy as jnp
from jax.experimental import pallas as pl
from jax.experimental.pallas import tpu as pltpu


def _round_up(x, m):
    return (x + m - 1) // m * m


def _vmem_limit_bytes():
    """Generation-aware scoped-VMEM cap (128 MiB physical on v5e/v6e, 64 MiB on v7x)."""
    try:
        cap = int(pltpu.get_tpu_info().vmem_capacity_bytes)
    except Exception:
        cap = 64 * 1024 * 1024
    return max(32 * 1024 * 1024, min(3 * cap // 4, 100 * 1024 * 1024))


# ---------------------------------------------------------------------------
# Bilinear interpolation matrices (PyTorch align_corners=False semantics)
# ---------------------------------------------------------------------------
def _interp_matrix_np(out_size, in_size, scale_factor):
    # F.interpolate(scale_factor=s, mode='bilinear', align_corners=False,
    # recompute_scale_factor=None):  src = (dst + 0.5) / s - 0.5, clamped at 0.
    inv = 1.0 / float(scale_factor)
    dst = np.arange(out_size, dtype=np.float64)
    src = np.maximum((dst + 0.5) * inv - 0.5, 0.0)
    i0 = np.minimum(np.floor(src).astype(np.int64), in_size - 1)
    i1 = np.minimum(i0 + 1, in_size - 1)
    w1 = (src - i0).astype(np.float32)
    w0 = 1.0 - w1
    M = np.zeros((out_size, in_size), np.float32)
    M[np.arange(out_size), i0] += w0
    M[np.arange(out_size), i1] += w1
    return M


def _mh_padded_np(Ho, H, scale):
    # Height interp matrix with a zero row prepended/appended: applying it
    # produces the vertically zero-padded resized image directly.
    m = np.zeros((Ho + 2, H), np.float32)
    m[1:Ho + 1, :] = _interp_matrix_np(Ho, H, scale)
    return m


def _mwx_concat_np(Wo, W, scale, Wp):
    # Three dx-shifted, zero-padded, transposed width matrices concatenated on
    # columns.  Block dx (shape (W, Wp)) satisfies
    #   mwx_dx[w, c] = Mw[c + dx - 1, w]  when 0 <= c + dx - 1 < Wo, else 0,
    # so (height-padded row) @ mwx_dx == the dx-shifted, horizontally padded
    # resized row on pitch Wp (a multiple of 128).
    MwT = _interp_matrix_np(Wo, W, scale).T          # (W, Wo)
    out = np.zeros((W, 3 * Wp), np.float32)
    for dx in range(3):
        for j in range(Wo):
            c = j + 1 - dx
            if 0 <= c < Wp:
                out[:, dx * Wp + c] = MwT[:, j]
    return out


# ---------------------------------------------------------------------------
# 1x1 lateral conv (tiled over N and the flattened spatial dim)
# ---------------------------------------------------------------------------
def _conv1x1_kernel(x_ref, w_ref, b_ref, o_ref):
    # x: (1, Cin, T)   w: (Cout, Cin)   b: (Cout, 1)   o: (1, Cout, T)
    y = jnp.dot(w_ref[...], x_ref[0], preferred_element_type=jnp.float32)
    o_ref[0] = (y + b_ref[...].astype(jnp.float32)).astype(o_ref.dtype)


def pallas_conv1x1(x, w, b, block_hw=4096):
    """1x1 conv + bias.  x: (N,Cin,H,W), w: (Cout,Cin), b: (Cout,1) -> (N,Cout,H*W)."""
    N, Ci, H, W = x.shape
    Co = w.shape[0]
    HW = H * W
    T = min(_round_up(HW, 128), _round_up(block_hw, 128))
    x3 = x.reshape(N, Ci, HW)                       # free HBM reshape, no pad/slice pass
    isz = x.dtype.itemsize
    # TODO(synk): for tiny Cin/Cout (like this test) a VPU broadcast-MAC would fill
    # better than a K=4 MXU matmul; production channel counts should stay MXU.
    return pl.pallas_call(
        _conv1x1_kernel,
        out_shape=jax.ShapeDtypeStruct((N, Co, HW), x.dtype),
        grid=(N, pl.cdiv(HW, T)),
        in_specs=[pl.BlockSpec((1, Ci, T), lambda n, j: (n, 0, j)),
                  pl.BlockSpec((Co, Ci), lambda n, j: (0, 0)),     # resident
                  pl.BlockSpec((Co, 1), lambda n, j: (0, 0))],     # resident
        out_specs=pl.BlockSpec((1, Co, T), lambda n, j: (n, 0, j)),
        compiler_params=pltpu.CompilerParams(
            dimension_semantics=("parallel", "parallel"),
            vmem_limit_bytes=_vmem_limit_bytes()),
        cost_estimate=pl.CostEstimate(
            flops=2 * N * HW * Ci * Co,
            transcendentals=0,
            bytes_accessed=isz * (N * Ci * HW + Ci * Co + Co + N * Co * HW)),
    )(x3, w, b)


# ---------------------------------------------------------------------------
# Fused bilinear resize + 3x3 conv (pad=1, stride=1) + bias
# ---------------------------------------------------------------------------
def _fused_resize_conv3x3_kernel(x_ref, mhp_ref, mwx_ref, w_ref, b_ref, o_ref,
                                 th_ref, xps_ref):
    # x_ref   : (1, Cin, H, W)           lateral feature map of one batch element
    # mhp_ref : (Ho+2, H)                height interp matrix with zero pad rows
    # mwx_ref : (W, 3*Wp) f32            3 dx-shifted zero-padded width matrices
    # w_ref   : (9, Cout, Cin)           3x3 taps, k = dy*3 + dx
    # b_ref   : (Cout, 1)
    # o_ref   : (1, Cout, Th*Wp)         lane-dense output rows [t*Th,(t+1)*Th) on pitch Wp
    # th_ref  : VMEM (Cin, Th+2, W) f32  height-resized + vertically padded row window
    # xps_ref : VMEM (3, Cin, (Th+2)*Wp) dx-shifted, fully padded, flat resized window
    t = pl.program_id(1)
    C = x_ref.shape[1]
    Co = o_ref.shape[1]
    Hloc = th_ref.shape[1]            # Th + 2 (1-row halo on each side)
    Th = Hloc - 2
    Wp = mwx_ref.shape[1] // 3

    # 1) Height pass; vertical zero padding / halo comes from the padded matrix rows.
    mhp = mhp_ref[pl.ds(t * Th, Hloc), :]                              # (Hloc, H)
    # TODO(synk): for large Cin convert this unrolled channel loop into a fori_loop.
    for c in range(C):
        th_ref[c] = jnp.dot(mhp, x_ref[0, c],
                            preferred_element_type=jnp.float32).astype(th_ref.dtype)

    # 2) Width pass; horizontal zero padding and the three dx shifts are folded
    #    into mwx.  Every store is a full (Cin, Wp) block at a 128-aligned lane
    #    offset -- no masked per-row stores, no separate zero-fill pass.
    th = th_ref[...]
    mwx = mwx_ref[...].astype(jnp.float32)
    for r in range(Hloc):
        wide = jnp.dot(th[:, r, :], mwx,
                       preferred_element_type=jnp.float32)             # (Cin, 3*Wp)
        for dx in range(3):
            xps_ref[dx, :, r * Wp:(r + 1) * Wp] = (
                wide[:, dx * Wp:(dx + 1) * Wp].astype(xps_ref.dtype))

    # 3) 9-tap 3x3 conv as flat (Cout,Cin) @ (Cin, Th*Wp) MXU matmuls; every tap
    #    slice starts at a multiple of Wp (128-aligned), so no lane rotations.
    acc = jnp.broadcast_to(b_ref[...].astype(jnp.float32), (Co, Th * Wp))
    for k in range(9):
        dy, dx = divmod(k, 3)
        patch = xps_ref[dx, :, dy * Wp: dy * Wp + Th * Wp]              # (Cin, Th*Wp)
        acc = acc + jnp.dot(w_ref[k], patch, preferred_element_type=jnp.float32)
    o_ref[0] = acc.astype(o_ref.dtype)


def _pick_row_tile(Ho, row_tile):
    t = max(1, min(row_tile, Ho))
    while Ho % t != 0:
        t -= 1
    return t


def pallas_fused_resize_conv3x3(x, w9, b, scale, row_tile=32):
    """Fused bilinear resize (align_corners=False) + 3x3 conv (pad=1) + bias.

    x: (N,Cin,H,W), w9: (9,Cout,Cin), b: (Cout,1)  ->  (N,Cout,Ho,Wo).
    """
    N, C, H, W = x.shape
    Co = w9.shape[1]
    Ho = int(math.floor(H * scale))
    Wo = int(math.floor(W * scale))
    Hp = Ho + 2
    Wp = _round_up(Wo + 2, 128)          # internal lane-aligned width pitch
    Th = _pick_row_tile(Ho, row_tile)    # output rows per grid step (VMEM bound)
    nt = Ho // Th

    mhp = jnp.asarray(_mh_padded_np(Ho, H, scale), dtype=x.dtype)
    mwx = jnp.asarray(_mwx_concat_np(Wo, W, scale, Wp), dtype=jnp.float32)
    isz = x.dtype.itemsize

    # TODO(synk): the resident weight/matrix inputs are still double-buffered by the
    # pipeline; pl.Buffered(1) on their BlockSpecs would free a little VMEM.
    out = pl.pallas_call(
        _fused_resize_conv3x3_kernel,
        out_shape=jax.ShapeDtypeStruct((N, Co, Ho * Wp), x.dtype),
        grid=(N, nt),
        in_specs=[pl.BlockSpec((1, C, H, W), lambda n, t: (n, 0, 0, 0)),
                  pl.BlockSpec((Hp, H), lambda n, t: (0, 0)),           # resident
                  pl.BlockSpec((W, 3 * Wp), lambda n, t: (0, 0)),       # resident
                  pl.BlockSpec((9, Co, C), lambda n, t: (0, 0, 0)),     # resident
                  pl.BlockSpec((Co, 1), lambda n, t: (0, 0))],          # resident
        out_specs=pl.BlockSpec((1, Co, Th * Wp), lambda n, t: (n, 0, t)),
        scratch_shapes=[pltpu.VMEM((C, Th + 2, W), jnp.float32),
                        pltpu.VMEM((3, C, (Th + 2) * Wp), x.dtype)],
        compiler_params=pltpu.CompilerParams(
            dimension_semantics=("parallel", "parallel"),
            vmem_limit_bytes=_vmem_limit_bytes()),
        cost_estimate=pl.CostEstimate(
            flops=2 * N * (C * Hp * H * W + C * Hp * W * 3 * Wp
                           + 9 * Co * C * Ho * Wp),
            transcendentals=0,
            bytes_accessed=isz * (N * C * H * W + N * Co * Ho * Wp)
                           + 4 * (Hp * H + W * 3 * Wp + 9 * Co * C + Co)),
    )(x, mhp, mwx, w9, b)
    # Drop the internal width padding with one cheap XLA slice (review suggestion).
    return out.reshape(N, Co, Ho, Wp)[:, :, :, :Wo]


# ---------------------------------------------------------------------------
# MultiLevelNeck forward (params + orchestration glue, all NCHW)
# ---------------------------------------------------------------------------
def init_params(key, in_channels, out_channels, num_outs):
    params = {'lateral': [], 'convs': []}
    for cin in in_channels:
        key, k1, k2 = jax.random.split(key, 3)
        params['lateral'].append((
            jax.random.normal(k1, (out_channels, cin), jnp.float32) * 0.1,   # (Cout, Cin)
            jax.random.normal(k2, (out_channels, 1), jnp.float32) * 0.1))    # (Cout, 1)
    for _ in range(num_outs):
        key, k1, k2 = jax.random.split(key, 3)
        params['convs'].append((
            jax.random.normal(k1, (9, out_channels, out_channels), jnp.float32) * 0.1,
            jax.random.normal(k2, (out_channels, 1), jnp.float32) * 0.1))
    return params


def multilevel_neck_forward(inputs_nchw, params, scales, *,
                            compute_dtype=jnp.float32, row_tile=32):
    assert len(inputs_nchw) == len(params['lateral'])
    # TODO(synk): the PyTorch forward's `print(inputs[0].shape)` debug side effect is omitted.
    cd = compute_dtype
    lat = []
    for i, x in enumerate(inputs_nchw):
        w, b = params['lateral'][i]
        N, Ci, H, W = x.shape
        y = pallas_conv1x1(x.astype(cd), w.astype(cd), b.astype(cd))   # (N, Cout, H*W)
        lat.append(y.reshape(N, w.shape[0], H, W))
    num_outs = len(scales)
    if len(lat) == 1:
        lat = [lat[0] for _ in range(num_outs)]
    outs = []
    for i in range(num_outs):
        w9, b3 = params['convs'][i]
        outs.append(pallas_fused_resize_conv3x3(
            lat[i], w9.astype(cd), b3.astype(cd), scales[i], row_tile=row_tile))
    return tuple(outs)


# ---------------------------------------------------------------------------
# Pure-JAX reference (NCHW, HIGHEST precision) for correctness checking
# ---------------------------------------------------------------------------
def reference_forward(inputs_nchw, params, scales):
    HI = jax.lax.Precision.HIGHEST
    lat = []
    for i, x in enumerate(inputs_nchw):
        w, b = params['lateral'][i]
        y = jnp.einsum('nchw,oc->nohw', x, w, precision=HI) + b.reshape(1, -1, 1, 1)
        lat.append(y)
    num_outs = len(scales)
    if len(lat) == 1:
        lat = [lat[0] for _ in range(num_outs)]
    outs = []
    for i in range(num_outs):
        x = lat[i]
        N, C, H, W = x.shape
        s = scales[i]
        Ho, Wo = int(math.floor(H * s)), int(math.floor(W * s))
        Mh = jnp.asarray(_interp_matrix_np(Ho, H, s))
        Mw = jnp.asarray(_interp_matrix_np(Wo, W, s))
        xr = jnp.einsum('oh,nchw->ncow', Mh, x, precision=HI)
        xr = jnp.einsum('pw,ncow->ncop', Mw, xr, precision=HI)
        w9, b3 = params['convs'][i]
        Cout, Cin = w9.shape[1], w9.shape[2]
        wt = jnp.transpose(w9.reshape(3, 3, Cout, Cin), (2, 3, 0, 1))     # OIHW
        y = jax.lax.conv_general_dilated(
            xr, wt, window_strides=(1, 1), padding=((1, 1), (1, 1)),
            dimension_numbers=('NCHW', 'OIHW', 'NCHW'), precision=HI)
        outs.append(y + b3.reshape(1, Cout, 1, 1))
    return tuple(outs)


# ---------------------------------------------------------------------------
if __name__ == "__main__":
    key = jax.random.PRNGKey(0)
    in_channels = [4]
    out_channels = 8
    scales = [0.5, 1, 2, 4]

    key, kx = jax.random.split(key)
    x = jax.random.normal(kx, (2, in_channels[0], 16, 16), jnp.float32)
    params = init_params(key, in_channels, out_channels, num_outs=len(scales))

    refs = reference_forward([x], params, scales)

    # f32 path (tight check; scale-4 level exercises the multi-row-tile path).
    outs = multilevel_neck_forward([x], params, scales)
    outs = jax.block_until_ready(outs)
    for o, r in zip(outs, refs):
        assert o.shape == r.shape, (o.shape, r.shape)
        np.testing.assert_allclose(np.asarray(o), np.asarray(r), rtol=2e-3, atol=2e-3)

    # bf16 storage / bf16 MXU path (halved HBM traffic, f32 accumulation).
    outs16 = multilevel_neck_forward([x], params, scales, compute_dtype=jnp.bfloat16)
    outs16 = jax.block_until_ready(outs16)
    for o, r in zip(outs16, refs):
        assert o.shape == r.shape, (o.shape, r.shape)
        np.testing.assert_allclose(np.asarray(o.astype(jnp.float32)), np.asarray(r),
                                   rtol=4e-2, atol=4e-2)

    print("KERNEL_OK")
</pallas_src>

<mosaic_0001>
module attributes {stable_mosaic.version = 11 : i64} {
  func.func @_conv1x1_kernel(%arg0: i32, %arg1: i32, %arg2: memref<1x4x256xf32, #tpu.memory_space<vmem>>, %arg3: memref<8x4xf32, #tpu.memory_space<vmem>>, %arg4: memref<8x1xf32, #tpu.memory_space<vmem>>, %arg5: memref<1x8x256xf32, #tpu.memory_space<vmem>>) attributes {dimension_semantics = [#tpu.dimension_semantics<parallel>, #tpu.dimension_semantics<parallel>], iteration_bounds = array<i64: 2, 1>, scalar_prefetch = 0 : i64, scratch_operands = 0 : i64, tpu.core_type = #tpu.core_type<tc>, window_params = [{transform_indices = @transform_0, window_bounds = array<i64: 1, 4, 256>}, {pipeline_mode = #tpu.pipeline_mode<synchronous>, transform_indices = @transform_1, window_bounds = array<i64: 8, 4>}, {pipeline_mode = #tpu.pipeline_mode<synchronous>, transform_indices = @transform_2, window_bounds = array<i64: 8, 1>}, {transform_indices = @transform_3, window_bounds = array<i64: 1, 8, 256>}]} {
    %c0 = arith.constant 0 : index
    %c0_0 = arith.constant 0 : index
    %0 = vector.load %arg3[%c0, %c0_0] : memref<8x4xf32, #tpu.memory_space<vmem>>, vector<8x4xf32>
    %c0_1 = arith.constant 0 : index
    %c0_2 = arith.constant 0 : index
    %c0_3 = arith.constant 0 : index
    %1 = vector.load %arg2[%c0_1, %c0_2, %c0_3] : memref<1x4x256xf32, #tpu.memory_space<vmem>>, vector<1x4x256xf32>
    %2 = vector.shape_cast %1 : vector<1x4x256xf32> to vector<4x256xf32>
    %cst = arith.constant dense<0.000000e+00> : vector<8x256xf32>
    %3 = tpu.matmul %0, %2, %cst {dimension_numbers = #tpu.dot_dimension_numbers<[1], [0], [0], [1], [0, 0, 1, 1], [], []>} : vector<8x4xf32>, vector<4x256xf32>, vector<8x256xf32> -> vector<8x256xf32>
    %c0_4 = arith.constant 0 : index
    %c0_5 = arith.constant 0 : index
    %4 = vector.load %arg4[%c0_4, %c0_5] : memref<8x1xf32, #tpu.memory_space<vmem>>, vector<8x1xf32>
    %5 = vector.broadcast %4 : vector<8x1xf32> to vector<8x256xf32>
    %6 = arith.addf %3, %5 : vector<8x256xf32>
    %c0_6 = arith.constant 0 : index
    %c0_7 = arith.constant 0 : index
    %c0_8 = arith.constant 0 : index
    %7 = vector.load %arg5[%c0_6, %c0_7, %c0_8] : memref<1x8x256xf32, #tpu.memory_space<vmem>>, vector<1x8x256xf32>
    %8 = vector.shape_cast %7 : vector<1x8x256xf32> to vector<8x256xf32>
    %9 = vector.shape_cast %6 : vector<8x256xf32> to vector<1x8x256xf32>
    tpu.vector_store %arg5[%c0_6, %c0_7, %c0_8], %9 {strides = array<i32>} : memref<1x8x256xf32, #tpu.memory_space<vmem>>, vector<1x8x256xf32>,
    return
  }
  func.func @transform_0(%arg0: i32, %arg1: i32) -> (i32, i32, i32) {
    %c0_i32 = arith.constant 0 : i32
    %c0_i32_0 = arith.constant 0 : i32
    return %arg0, %c0_i32, %arg1 : i32, i32, i32
  }
  func.func @transform_1(%arg0: i32, %arg1: i32) -> (i32, i32) {
    %c0_i32 = arith.constant 0 : i32
    %c0_i32_0 = arith.constant 0 : i32
    %c0_i32_1 = arith.constant 0 : i32
    return %c0_i32, %c0_i32_0 : i32, i32
  }
  func.func @transform_2(%arg0: i32, %arg1: i32) -> (i32, i32) {
    %c0_i32 = arith.constant 0 : i32
    %c0_i32_0 = arith.constant 0 : i32
    %c0_i32_1 = arith.constant 0 : i32
    return %c0_i32, %c0_i32_0 : i32, i32
  }
  func.func @transform_3(%arg0: i32, %arg1: i32) -> (i32, i32, i32) {
    %c0_i32 = arith.constant 0 : i32
    %c0_i32_0 = arith.constant 0 : i32
    return %arg0, %c0_i32, %arg1 : i32, i32, i32
  }
}

</mosaic_0001>

<bundles_post_ra>
// kernel: tpu_custom_call.1
= control target key start
LH: loop header
LB: loop body
LE: loop exit
PB: predicated region body
PF: predicated region fallthrough
CT: control target
= control target key end

     0   :  { %8 = vsyncpa [#allocation3], 0  ;;  %s668_s0 = inlined_call_operand.vmem [shape: f32[2,4,256], index: 0, kind: input, shape index: {}]   ;;  %s669_s1 = inlined_call_operand.vmem [shape: f32[8,4], index: 1, kind: input, shape index: {}]   ;;  %s670_s2 = inlined_call_operand.vmem [shape: f32[8,1], index: 2, kind: input, shape index: {}]   ;;  %s671_s3 = inlined_call_operand.hbm [shape: f32[2,8,256], index: 3, kind: output, shape index: {}]  }
   0x1   :  { %10 = vsyncpa [#allocation3 + $0x1], 0  ;;  %s563_s12 = smov 0   ;;  %s565_s13 = smov 0  }
   0x2   :  { %s567_s14 = smov 0   ;;  %s569_s15 = smov 0  }
   0x3   :  { %s571_s16 = smov 0   ;;  %s573_s17 = smov 0  }
   0x4 LB: > { %s385_s18 = sadd.s32 4294967295, %s538_s17   ;;  %s386_s19 = sadd.s32 4294967294, %s538_s17   ;;  %s538_s17 = sphi %s573_s17, %s16_s17   ;;  %s534_s16 = sphi %s571_s16, %s678_s16   ;;  %s530_s15 = sphi %s569_s15, %s677_s15   ;;  %s526_s14 = sphi %s567_s14, %s676_s14   ;;  %s522_s13 = sphi %s565_s13, %s675_s13   ;;  %s518_s12 = sphi %s563_s12, %s674_s12  }
   0x5   : > { %s28_s20 = sadd.s32 1, %s534_s16  ;;  %s107_s21 = sadd.s32 1, %s526_s14 }
   0x6   : > { %p30_p0 = scmp.ge.s32.totalorder %s28_s20, 2  ;;  %p117_p1 = scmp.ne.s32.totalorder %s526_s14, %s522_s13 }
   0x7   : > { %p118_p2 = scmp.eq.s32.totalorder %s385_s18, 1  ;;  %p123_p3 = scmp.ne.s32.totalorder %s522_s13, %s518_s12 }
   0x8   : > { %s680_s20 = smov (%p30_p0, %s28_s20), 0  ;;  %p124_p5 = scmp.eq.s32.totalorder %s386_s19, 1 }
   0x9   : > { %p603_p4 = por %p118_p2, %p117_p1  ;;  %s102_s23 = ssub.s32 %s534_s16, %s680_s20 }
   0xa   : > { %p389_p6 = scmp.ge.s32.totalorder %s538_s17, 1  ;;  %p105_p7 = scmp.eq.s32.totalorder %s102_s23, 0 }
   0xb   : > { %p610_p8 = por %p124_p5, %p123_p3  ;;  %p161_p9 = scmp.lt.s32.totalorder %s538_s17, 3 }
   0xc   : > { %s616_s25 = scalar_select %p105_p7, %s526_s14, %s107_s21  }
   0xd   : > { %p162_p10 = pnand %p389_p6, %p161_p9 }
   0xe   : > { %p190_p11 = scmp.lt.s32.totalorder (!%p162_p10), %s530_s15, 1  ;;  %s186_s8 = sand.u32 (!%p162_p10), 1, %s522_s13  }
   0xf   : > { %165 = sbr.rel (%p162_p10) target bundleno = 239 (0xef), region = 32  ;;  %s390_s9 = sshll.u32 (!%p162_p10), %s186_s8, 4 }
  0x10   : > { %s402_s10 = sshll.u32 (!%p162_p10), %s530_s15, 8  ;;  %s188_s11 = scalar_lea.vmem (!%p162_p10), [#allocation2], %s390_s9 }
  0x11   : > { %s309_s18 = sshll.u32 (!%p162_p10), %s188_s11, 4  ;;  %s307_s23 = scalar_lea.hbm (!%p162_p10), %s671_s3, %s402_s10  ;;  %s310_s18 = int_to_ptr.vmem [resolvable:$true] %s309_s18 }
  0x12   : > { %s293_s26 = scalar_lea.sflag (!%p162_p10), [#allocation3], %s186_s8  ;;  %s462_s27 = scalar_lea.vmem (!%p162_p10), %s310_s18, 256 }
  0x13   : > { %p463_p12 = scmp.ne.s32.totalorder (!%p162_p10), %s310_s18, %s462_s27 }
  0x14   : > { %v540_v0 = vmov 0.0   ;;  %v541_v1 = vmov 0   ;;  %v202_v2 = vld [vmem:[%s670_s2] sm:$0xff]  ;;  %s191_s28 = scalar_select %p190_p11, %s530_s15, 1  ;;  %vm214_vm0 = vcmask 1043456   ;;  %vm210_vm1 = vcmask 31744  }
  0x15   : > { %283 = vmatprep.mubr.f32.mxu0 %v540_v0  ;;  %460 = vset.pattern.permute.xlu0 %v541_v1  ;;  %v200_v5 = vld [vmem:[%s669_s1] sm:$0xff]  ;;  %p464_p13 = pnand %p463_p12, %p603_p4 }
  0x16   : > { %205 = vperm.xlu0 %460, %v202_v2   ;;  %s401_s29 = sshll.u32 %s191_s28, 3  ;;  %s542_s28 = smov [#allocation2]  }
  0x17   : > { %s197_s5 = scalar_lea.vmem %s668_s0, %s401_s29  ;;  %p465_p0 = pneg %p464_p13 }
  0x18   : > { %v201_v3 = vld [vmem:[%s197_s5] sm:$0xff]  ;;  %s466_s15 = sshll.u32 %s542_s28, 4  ;;  %s467_s15 = int_to_ptr.vmem [resolvable:$false] %s466_s15 }
  0x19   : > { %v209_v4 = vcombine.high %v201_v3, %v201_v3  ;;  %s468_s29 = scalar_lea.vmem %s467_s15, 512  ;;  %p469_p1 = scmp.lt.s32.totalorder %s310_s18, %s467_s15 }
  0x1a   : > { %p470_p2 = scmp.lt.s32.totalorder %s468_s29, %s462_s27 }
  0x1b   : > { %393 = vmatprep.subr.msk.mxu0 %vm214_vm0, %v209_v4 }
  0x1c   : > { %394 = vmatpush1.msk.msra.mxu0 %vm214_vm0, %v201_v3  ;;  %p471_p3 = por %p470_p2, %p469_p1 }
  0x1d   : > { %395 = vmatmul.mubr.msk.f32.vlgmr.msra.gmra.mxu0 %vm210_vm1, %v200_v5 }
  0x1e   : > { %p472_p5 = pnand %p471_p3, %p465_p0 }
  0x91   : > { %v206_v6 = vpop.permute.xlu0 %205 }
  0xdd   : > { %v285_v7 = vpop.f32.mrf.mxu0 }
  0xde   : > { %v286_v8 = vadd.f32 %v285_v7, %v206_v6 }
  0xdf   : > { %v287_v9 = vpop.f32.mrf.mxu0 }
  0xe0   : > { %290 = vst [vmem:[%s188_s11] sm:$0xff] %v286_v8  ;;  %v288_v10 = vadd.f32 %v287_v9, %v206_v6 }
  0xe2   : > { %291 = vst [vmem:[%s188_s11 + $0x8] sm:$0xff] %v288_v10 }
  0xe3   : > { %475 = shalt.err (!%p472_p5)
}
  0xe4   : > { %s476_s30 = scalar_lea.hbm %s307_s23, 256  ;;  %s480_s6 = scalar_lea.hbm %s671_s3, 512 }
  0xe5   : > { %p477_p6 = scmp.ne.s32.totalorder %s307_s23, %s476_s30  ;;  %p481_p10 = scmp.lt.s32.totalorder %s307_s23, %s671_s3 }
  0xe6   : > { %p482_p11 = scmp.lt.s32.totalorder %s480_s6, %s476_s30 }
  0xe7   : > { %p478_p7 = pnand %p477_p6, %p603_p4 }
  0xe8   : > { %p483_p12 = por %p482_p11, %p481_p10 }
  0xe9   : > { %p479_p9 = pneg %p478_p7 }
  0xeb   : > { %p484_p13 = pnand %p483_p12, %p479_p9 }
  0xed   : > { %487 = shalt.err (!%p484_p13)
}
  0xee   : > { %403 = dma.vmem_to_hbm [thread:$0]  (%p603_p4), %s310_s18, 256, %s307_s23, %s293_s26  }
  0xef PF: > { %p409_p0 = scmp.ge.s32.totalorder %s538_s17, 2  ;;  %s321_s9 = sand.u32 1, %s518_s12  }
  0xf0   : > { %s322_s10 = scalar_lea.sflag [#allocation3], %s321_s9 }
  0xf1   : > { %p406_p1 = pnand %p409_p0, %p610_p8 }
  0xf3   : > { %p407_p2 = pneg %p406_p1 }
  0xf5   : > { %513 = dma.done.wait (%p407_p2), %s322_s10, 256  }
  0xf6   : > { %515 = vsyncadd (%p407_p2), %s322_s10, 4294967040  ;;  %s16_s17 = sadd.s32 1, %s538_s17   ;;  %s674_s12 = smov %s522_s13 }
  0xf7   : > { %p13_p3 = scmp.ge.s32.totalorder %s16_s17, 4   ;;  %s675_s13 = smov %s526_s14 }
  0xf8   : > { %s676_s14 = smov %s616_s25  ;;  %s677_s15 = smov %s534_s16 }
  0xf9   : > { %s678_s16 = smov %s680_s20  ;;  %15 = sbr.rel (!%p13_p3) target bundleno = 4 (0x4), region = 67 }
  0xfe   :  { %327 = vsyncpa [#allocation3], 1 }
  0xff   :  { %329 = vsyncpa [#allocation3 + $0x1], 1 }

</bundles_post_ra>
